<compile_context>
chip_gen: v6e
topology: v6e:2x2x1
jax: 0.10.0
libtpu: 0.0.40
codegen_flags: <defaults>
</compile_context>

<pallas_src>
import jax
import jax.numpy as jnp
from jax.experimental import pallas as pl
from jax.experimental.pallas import tpu as pltpu

_MiB = 1024 * 1024


def _round_up(x: int, m: int) -> int:
    return ((x + m - 1) // m) * m


def _sublane_granule(dtype) -> int:
    # f32 -> 8 sublanes, bf16 -> 16, int8/fp8 -> 32 (packed sublanes).
    return max(8, 32 // jnp.dtype(dtype).itemsize)


def _vmem_budget_bytes() -> int:
    """Physical VMEM minus headroom for compiler-internal scratch."""
    try:
        cap = int(pltpu.get_tpu_info().vmem_capacity_bytes)
    except Exception:
        cap = 64 * _MiB  # conservative (v7x per-TC)
    return max(32 * _MiB, cap - 16 * _MiB)


_BUFFERED_PROBE_RESULT = None


def _buffered_weight_supported() -> bool:
    """Probe once whether pipeline_mode=pl.Buffered(1) compiles on this JAX/Mosaic."""
    global _BUFFERED_PROBE_RESULT
    if _BUFFERED_PROBE_RESULT is not None:
        return _BUFFERED_PROBE_RESULT
    if not hasattr(pl, "Buffered"):
        _BUFFERED_PROBE_RESULT = False
        return False
    try:  # deliberate capability probe; broad except is scoped to the probe only
        spec = pl.BlockSpec((8, 128), lambda i: (0, 0), pipeline_mode=pl.Buffered(1))

        def _probe_kernel(a_ref, o_ref):
            o_ref[...] = a_ref[...]

        probe = pl.pallas_call(
            _probe_kernel,
            out_shape=jax.ShapeDtypeStruct((8, 128), jnp.float32),
            grid_spec=pltpu.PrefetchScalarGridSpec(
                num_scalar_prefetch=0,
                grid=(1,),
                in_specs=[spec],
                out_specs=pl.BlockSpec((8, 128), lambda i: (0, 0)),
            ),
        )
        jax.jit(probe).lower(jax.ShapeDtypeStruct((8, 128), jnp.float32)).compile()
        _BUFFERED_PROBE_RESULT = True
    except Exception:
        _BUFFERED_PROBE_RESULT = False
    return _BUFFERED_PROBE_RESULT


def _patch_embed_kernel(x_ref, w_ref, o_ref):
    # x_ref: (tm, K) row tile of flattened patches, source dtype (cast here).
    # w_ref: (K, E)  full projection weight, compute dtype.
    # o_ref: (tm, E) output tile, compute dtype.
    x = x_ref[...].astype(w_ref.dtype)  # mirrors .to(target_dtype); hidden under MXU
    o_ref[...] = jnp.dot(
        x, w_ref[...], preferred_element_type=jnp.float32
    ).astype(o_ref.dtype)


class Qwen25PatchEmbedPallas:
    """Pallas re-implementation of Qwen2_5_PatchEmbed (bias-free Conv3d patchify)."""

    def __init__(self, patch_size=14, temporal_patch_size=2, in_channels=3,
                 embed_dim=1152, dtype=jnp.bfloat16, row_block=1024, key=None):
        self.patch_size = patch_size
        self.temporal_patch_size = temporal_patch_size
        self.in_channels = in_channels
        self.embed_dim = embed_dim
        self.dtype = jnp.dtype(dtype)
        self.row_block = int(row_block)
        self._buffered_weight = _buffered_weight_supported()
        self._call_cache = {}

        if key is None:
            key = jax.random.PRNGKey(0)
        k = in_channels * temporal_patch_size * patch_size * patch_size
        self.k = k
        bound = 1.0 / (k ** 0.5)
        # Conv3d weight layout: (E, C, T, P, P), deterministic uniform init.
        self.weight = jax.random.uniform(
            key,
            (embed_dim, in_channels, temporal_patch_size, patch_size, patch_size),
            dtype=jnp.float32, minval=-bound, maxval=bound,
        ).astype(self.dtype)
        # Flatten to (E, K) and transpose ONCE to the MXU-canonical (K, E) RHS.
        # No K padding: the weight block spans the full K dim, Mosaic pads lanes.
        self.w_kE = jnp.transpose(self.weight.reshape(embed_dim, k), (1, 0))

    # ------------------------------------------------------------------ #

    def _footprint_bytes(self, tm: int, x_itemsize: int) -> int:
        """Estimated VMEM footprint: 2x X tile + 2x out tile + weight buffer(s)."""
        k_lanes = _round_up(self.k, 128)
        e_lanes = _round_up(self.embed_dim, 128)
        w_itemsize = self.dtype.itemsize
        k_sub = _round_up(self.k, _sublane_granule(self.dtype))
        x_bytes = 2 * tm * k_lanes * x_itemsize
        o_bytes = 2 * tm * e_lanes * w_itemsize
        w_bytes = (1 if self._buffered_weight else 2) * k_sub * e_lanes * w_itemsize
        return x_bytes + o_bytes + w_bytes

    def _build_call(self, n: int, tm: int, x_dtype):
        k, e = self.k, self.embed_dim
        x_itemsize = jnp.dtype(x_dtype).itemsize
        w_itemsize = self.dtype.itemsize

        if self._buffered_weight:
            # Constant index_map -> weight is DMA'd once; single-buffer it to
            # halve its VMEM footprint (matters most on v7x's 64 MiB VMEM).
            w_spec = pl.BlockSpec((k, e), lambda i: (0, 0),
                                  pipeline_mode=pl.Buffered(1))
        else:
            w_spec = pl.BlockSpec((k, e), lambda i: (0, 0))

        footprint = self._footprint_bytes(tm, x_itemsize)
        vmem_limit = int(min(_vmem_budget_bytes(),
                             max(32 * _MiB, footprint + 8 * _MiB)))

        cost = pl.CostEstimate(
            flops=2 * n * k * e,
            transcendentals=0,
            bytes_accessed=n * k * x_itemsize + k * e * w_itemsize + n * e * w_itemsize,
        )

        return pl.pallas_call(
            _patch_embed_kernel,
            out_shape=jax.ShapeDtypeStruct((n, e), self.dtype),
            grid_spec=pltpu.PrefetchScalarGridSpec(
                num_scalar_prefetch=0,
                grid=(pl.cdiv(n, tm),),
                in_specs=[
                    # X tile: (tm, K); K spans the full dim so no lane padding
                    # is needed on the wrapper side.
                    pl.BlockSpec((tm, k), lambda i: (i, 0)),
                    w_spec,
                ],
                out_specs=pl.BlockSpec((tm, e), lambda i: (i, 0)),
            ),
            compiler_params=pltpu.CompilerParams(
                dimension_semantics=("parallel",),   # megacore sharding on v7x
                vmem_limit_bytes=vmem_limit,         # footprint-derived, with headroom
            ),
            cost_estimate=cost,
        )

    # ------------------------------------------------------------------ #

    def __call__(self, hidden_states):
        k = self.k
        # Mirror hidden_states.view(-1, C, T, P, P): flattening each patch to a
        # K-length row in (c, t, h, w) order matches the Conv3d weight layout.
        # No cast and no pad here — both are folded into the kernel / BlockSpec.
        x = hidden_states.reshape(-1, k)
        n = x.shape[0]
        x_dtype = x.dtype

        # Sublane granule follows the stricter of input / output dtypes.
        granule = max(_sublane_granule(x_dtype), _sublane_granule(self.dtype))

        tm = _round_up(max(self.row_block, granule), granule)
        if n > granule:
            # Keep >= 2 grid steps so the "parallel" row axis can shard across
            # both TensorCores on v7x (harmless on single-TC v5e/v6e).
            tm = min(tm, _round_up(pl.cdiv(n, 2), granule))
        else:
            tm = granule

        # Shrink the tile until the pipelined footprint fits the VMEM budget.
        budget = _vmem_budget_bytes()
        x_itemsize = jnp.dtype(x_dtype).itemsize
        while tm > granule and self._footprint_bytes(tm, x_itemsize) > budget:
            tm = max(granule, _round_up(tm // 2, granule))

        cache_key = (n, tm, jnp.dtype(x_dtype).name)
        call = self._call_cache.get(cache_key)
        if call is None:
            call = self._build_call(n, tm, x_dtype)
            self._call_cache[cache_key] = call
        return call(x, self.w_kE)


if __name__ == "__main__":
    # Small but representative shapes: K = 3*2*4*4 = 96 (full-dim block, no pad),
    # embed_dim = 128 (lane-dense output), row_block = 32 so the grid has
    # multiple steps.
    patch_size = 4
    temporal_patch_size = 2
    in_channels = 3
    embed_dim = 128
    K = in_channels * temporal_patch_size * patch_size * patch_size  # 96

    key = jax.random.PRNGKey(0)
    k_w, k_x1, k_x2, k_x3 = jax.random.split(key, 4)

    # ---------------- f32 module: tight-tolerance checks ---------------- #
    mod_f32 = Qwen25PatchEmbedPallas(
        patch_size=patch_size, temporal_patch_size=temporal_patch_size,
        in_channels=in_channels, embed_dim=embed_dim,
        dtype=jnp.float32, row_block=32, key=k_w)
    w_f32 = mod_f32.weight.reshape(embed_dim, K).astype(jnp.float32)

    # Case 1: row count divisible by the tile (grid of 3 full blocks).
    x1 = jax.random.normal(k_x1, (96, K), dtype=jnp.float32)
    out1 = jax.block_until_ready(mod_f32(x1))
    ref1 = x1 @ w_f32.T
    assert out1.shape == (96, embed_dim)
    assert jnp.allclose(out1, ref1, atol=1e-4, rtol=1e-4)

    # Case 2: ragged tail (n=40 -> cdiv grid with a masked edge block).
    x2 = jax.random.normal(k_x2, (40, K), dtype=jnp.float32)
    out2 = jax.block_until_ready(mod_f32(x2))
    ref2 = x2 @ w_f32.T
    assert out2.shape == (40, embed_dim)
    assert jnp.allclose(out2, ref2, atol=1e-4, rtol=1e-4)

    # ------------- bf16 module (default feed path): loose tol ----------- #
    # f32 input is cast to bf16 INSIDE the kernel (mirrors .to(target_dtype)),
    # MXU runs bf16 x bf16 with f32 accumulation, output is bf16.
    mod_bf16 = Qwen25PatchEmbedPallas(
        patch_size=patch_size, temporal_patch_size=temporal_patch_size,
        in_channels=in_channels, embed_dim=embed_dim,
        dtype=jnp.bfloat16, row_block=32, key=k_w)
    w_bf = mod_bf16.weight.reshape(embed_dim, K).astype(jnp.float32)

    x3 = jax.random.normal(k_x3, (64, K), dtype=jnp.float32)
    out3 = jax.block_until_ready(mod_bf16(x3))
    ref3 = x3.astype(jnp.bfloat16).astype(jnp.float32) @ w_bf.T
    assert out3.shape == (64, embed_dim) and out3.dtype == jnp.bfloat16
    assert jnp.allclose(out3.astype(jnp.float32), ref3, atol=3e-2, rtol=3e-2)

    print("KERNEL_OK")
</pallas_src>

<mosaic_0001>
module attributes {stable_mosaic.version = 11 : i64} {
  func.func @_patch_embed_kernel(%arg0: i32, %arg1: memref<32x96xf32, #tpu.memory_space<vmem>>, %arg2: memref<96x128xf32, #tpu.memory_space<vmem>>, %arg3: memref<32x128xf32, #tpu.memory_space<vmem>>) attributes {dimension_semantics = [#tpu.dimension_semantics<parallel>], iteration_bounds = array<i64: 3>, scalar_prefetch = 0 : i64, scratch_operands = 0 : i64, tpu.core_type = #tpu.core_type<tc>, window_params = [{transform_indices = @transform_0, window_bounds = array<i64: 32, 96>}, {pipeline_mode = #tpu.pipeline_mode<synchronous>, transform_indices = @transform_1, window_bounds = array<i64: 96, 128>}, {transform_indices = @transform_2, window_bounds = array<i64: 32, 128>}]} {
    %c0 = arith.constant 0 : index
    %c0_0 = arith.constant 0 : index
    %0 = vector.load %arg1[%c0, %c0_0] : memref<32x96xf32, #tpu.memory_space<vmem>>, vector<32x96xf32>
    %c0_1 = arith.constant 0 : index
    %c0_2 = arith.constant 0 : index
    %1 = vector.load %arg2[%c0_1, %c0_2] : memref<96x128xf32, #tpu.memory_space<vmem>>, vector<96x128xf32>
    %cst = arith.constant dense<0.000000e+00> : vector<32x128xf32>
    %2 = tpu.matmul %0, %1, %cst {dimension_numbers = #tpu.dot_dimension_numbers<[1], [0], [0], [1], [0, 0, 1, 1], [], []>} : vector<32x96xf32>, vector<96x128xf32>, vector<32x128xf32> -> vector<32x128xf32>
    %c0_3 = arith.constant 0 : index
    %c0_4 = arith.constant 0 : index
    %3 = vector.load %arg3[%c0_3, %c0_4] : memref<32x128xf32, #tpu.memory_space<vmem>>, vector<32x128xf32>
    tpu.vector_store %arg3[%c0_3, %c0_4], %2 {strides = array<i32>} : memref<32x128xf32, #tpu.memory_space<vmem>>, vector<32x128xf32>,
    return
  }
  func.func @transform_0(%arg0: i32) -> (i32, i32) {
    %c0_i32 = arith.constant 0 : i32
    %c0_i32_0 = arith.constant 0 : i32
    return %arg0, %c0_i32 : i32, i32
  }
  func.func @transform_1(%arg0: i32) -> (i32, i32) {
    %c0_i32 = arith.constant 0 : i32
    %c0_i32_0 = arith.constant 0 : i32
    %c0_i32_1 = arith.constant 0 : i32
    return %c0_i32, %c0_i32_0 : i32, i32
  }
  func.func @transform_2(%arg0: i32) -> (i32, i32) {
    %c0_i32 = arith.constant 0 : i32
    %c0_i32_0 = arith.constant 0 : i32
    return %arg0, %c0_i32 : i32, i32
  }
}

</mosaic_0001>

<bundles_post_ra>
// kernel: tpu_custom_call.1
= control target key start
LH: loop header
LB: loop body
LE: loop exit
PB: predicated region body
PF: predicated region fallthrough
CT: control target
= control target key end

     0   :  { %7 = vsyncpa [#allocation3], 0  ;;  %s884_s0 = inlined_call_operand.hbm [shape: f32[96,96], index: 0, kind: input, shape index: {}]   ;;  %s885_s1 = inlined_call_operand.hbm [shape: f32[96,128], index: 1, kind: input, shape index: {}]   ;;  %s886_s2 = inlined_call_operand.hbm [shape: f32[96,128], index: 2, kind: output, shape index: {}]  }
   0x1   :  { %9 = vsyncpa [#allocation3 + $0x1], 0 }
   0x2   :  { %10 = vsyncpa [#allocation6], 0 }
   0x3   :  { %11 = vsyncpa [#allocation4], 0 }
   0x4   :  { %13 = vsyncpa [#allocation4 + $0x1], 0  ;;  %s693_s9 = smov 0   ;;  %s695_s10 = smov 0  }
   0x5   :  { %s697_s11 = smov 0   ;;  %s699_s12 = smov 0  }
   0x6 LB: > { %s714_s13 = sadd.s32 4294967295, %s669_s12   ;;  %s394_s14 = sadd.s32 4294967294, %s669_s12   ;;  %s669_s12 = sphi %s699_s12, %s907_s12   ;;  %s665_s11 = sphi %s697_s11, %s906_s11   ;;  %s661_s10 = sphi %s695_s10, %s905_s10   ;;  %s657_s9 = sphi %s693_s9, %s904_s9  }
   0x7   : > { %p39_p0 = scmp.ne.s32.totalorder %s661_s10, %s657_s9  ;;  %p887_p1 = scmp.eq.s32.totalorder %s714_s13, 0 }
   0x8   : > { %p90_p3 = scmp.eq.s32.totalorder %s394_s14, 2  ;;  %p395_p5 = scmp.ge.s32.totalorder %s669_s12, 1 }
   0x9   : > { %p723_p4 = por %p887_p1, %p39_p0  ;;  %p97_p7 = scmp.lt.s32.totalorder %s669_s12, 4 }
   0xa   : > { %p728_p6 = por %p90_p3, %p39_p0  ;;  %s671_s18 = smov [#allocation5]  }
   0xb   : > { %s891_s15 = scalar_select %p723_p4, 1, 0 }
   0xc   : > { %s892_s16 = scalar_select %p728_p6, 1, 0 }
   0xd   : > { %p733_p8 = pnand %p395_p5, %p97_p7  ;;  %s109_s19 = sshll.u32 %s671_s18, 4  ;;  %s110_s19 = int_to_ptr.vmem [resolvable:$true] %s109_s19 }
   0xe   : > { %s746_s21 = sadd.s32 1, %s669_s12   ;;  %s26_s22 = sadd.s32 1, %s665_s11 }
   0xf   : > { %s893_s17 = scalar_select %p733_p8, 1, 0 }
  0x10   : > { %p494_p9 = pneg %p733_p8  ;;  %s23_s23 = ssub.s32 %s669_s12, %s746_s21 }
  0x11   : > { %s558_s24 = scalar_lea.vmem %s110_s19, 1536  ;;  %p566_p3 = scmp.lt.s32.totalorder %s110_s19, %s110_s19 }
  0x12   : > { %p741_p10 = pnand %p494_p9, %p887_p1  ;;  %p559_p12 = scmp.ne.s32.totalorder %s110_s19, %s558_s24 }
  0x13   : > { %p567_p5 = scmp.lt.s32.totalorder %s558_s24, %s558_s24 }
  0x14   : > { %p549_p11 = pneg %p741_p10 }
  0x15   : > { %p568_p7 = por %p567_p5, %p566_p3 }
  0x16   : > { %p561_p13 = pnand %p559_p12, %p549_p11 }
  0x18   : > { %p562_p0 = pneg %p561_p13 }
  0x1a   : > { %p569_p2 = pnand %p568_p7, %p562_p0 }
  0x1c   : > { %572 = shalt.err (!%p569_p2)
}
  0x1d   : > { %s672_s25 = smov 128   ;;  %s673_s26 = smov 8  }
  0x1e   : > { %497 = dma.hbm_to_vmem [thread:$0]  (!%p741_p10), %s885_s1, 1536, %s110_s19, [#allocation6], %s672_s25, %s672_s25, %s673_s26  }
  0x1f   : > { %p24_p2 = scmp.eq.s32.totalorder %s23_s23, 0  ;;  %p33_p9 = scmp.ne.s32.totalorder %s665_s11, %s661_s10 }
  0x20   : > { %p34_p11 = scmp.eq.s32.totalorder %s669_s12, 0  ;;  %p507_p12 = scmp.lt.s32.totalorder %s669_s12, 3 }
  0x21   : > { %s766_s29 = scalar_select %p24_p2, %s665_s11, %s26_s22  }
  0x22   : > { %p35_p13 = por %p34_p11, %p33_p9  ;;  %p895_p0 = scmp.eq.s32.totalorder %s714_s13, 2 }
  0x23   : > { %s123_s3 = sand.u32 1, %s665_s11   ;;  %s414_s4 = sshll.u32 %s669_s12, 9 }
  0x24   : > { %p770_p3 = por %p895_p0, %p33_p9  ;;  %s398_s5 = sshll.u32 %s123_s3, 5 }
  0x25   : > { %s779_s8 = scalar_lea.hbm %s884_s0, %s414_s4  ;;  %s127_s14 = scalar_lea.vmem [#allocation2], %s398_s5 }
  0x26   : > { %s896_s30 = scalar_select %p770_p3, 1, 0 }
  0x27   : > { %s134_s18 = sshll.u32 %s127_s14, 4  ;;  %p781_p10 = pnand %p507_p12, %p35_p13  ;;  %s785_s18 = int_to_ptr.vmem [resolvable:$true] %s134_s18 }
  0x28   : > { %s787_s20 = scalar_lea.sflag [#allocation3], %s123_s3  ;;  %s573_s22 = scalar_lea.hbm %s779_s8, 512 }
  0x29   : > { %p574_p5 = scmp.ne.s32.totalorder %s779_s8, %s573_s22  ;;  %p575_p7 = pneg %p781_p10 }
  0x2a   : > { %s578_s27 = scalar_lea.hbm %s884_s0, 1536  ;;  %p579_p11 = scmp.lt.s32.totalorder %s779_s8, %s884_s0 }
  0x2b   : > { %p576_p2 = pnand %p575_p7, %p574_p5  ;;  %p580_p12 = scmp.lt.s32.totalorder %s578_s27, %s573_s22 }
  0x2d   : > { %p577_p9 = pneg %p576_p2  ;;  %p581_p13 = por %p580_p12, %p579_p11 }
  0x2f   : > { %p582_p0 = pnand %p581_p13, %p577_p9 }
  0x31   : > { %585 = shalt.err (!%p582_p0)
}
  0x32   : > { %s586_s3 = scalar_lea.vmem %s785_s18, 512  ;;  %s674_s5 = smov [#allocation2]  }
  0x33   : > { %p587_p1 = scmp.ne.s32.totalorder %s785_s18, %s586_s3  ;;  %s591_s6 = sshll.u32 %s674_s5, 4  ;;  %s592_s6 = int_to_ptr.vmem [resolvable:$false] %s591_s6 }
  0x34   : > { %s593_s7 = scalar_lea.vmem %s592_s6, 1024  ;;  %p594_p2 = scmp.lt.s32.totalorder %s785_s18, %s592_s6 }
  0x35   : > { %p589_p6 = pnand %p587_p1, %p575_p7  ;;  %p595_p3 = scmp.lt.s32.totalorder %s593_s7, %s586_s3 }
  0x37   : > { %p590_p5 = pneg %p589_p6  ;;  %p596_p4 = por %p595_p3, %p594_p2 }
  0x39   : > { %p597_p8 = pnand %p596_p4, %p590_p5 }
  0x3b   : > { %600 = shalt.err (!%p597_p8)
}
  0x3c   : > { %501 = dma.hbm_to_vmem [thread:$0]  (!%p781_p10), %s779_s8, 512, %s785_s18, %s787_s20, %s672_s25, %s672_s25, %s673_s26  }
  0x3d   : > { %p898_p1 = scmp.ne.s32.totalorder %s893_s17, 0 }
  0x3e   : > { %s814_s14 = sand.u32 (!%p898_p1), 1, %s661_s10   ;;  %p899_p4 = scmp.ne.s32.totalorder (!%p898_p1), %s891_s15, 0 }
  0x3f   : > { %146 = sbr.rel (%p898_p1) target bundleno = 307 (0x133), region = 28  ;;  %s402_s22 = sshll.u32 (!%p898_p1), %s814_s14, 5 }
  0x40   : > { %s149_s23 = scalar_lea.sflag (!%p898_p1), [#allocation3], %s814_s14  ;;  %s820_s19 = scalar_lea.vmem (!%p898_p1), [#allocation2], %s402_s22 }
  0x44   : > { %644 = dma.done.wait (%p899_p4), %s149_s23, 512  }
  0x45   : > { %646 = vsyncadd (%p899_p4), %s149_s23, 4294966784  ;;  %p900_p6 = scmp.eq.s32.totalorder %s714_s13, 0 }
  0x47   : > { %648 = dma.done.wait (%p900_p6), [#allocation6], 1536   ;;  %p901_p8 = pmov %p900_p6 }
  0x48   : > { %v194_v0 = vld [vmem:[#allocation5 + $0x58] sm:$0xff]  ;;  %v193_v1 = vld [vmem:[#allocation5 + $0x50] sm:$0xff]  ;;  %v192_v2 = vld [vmem:[#allocation5 + $0x48] sm:$0xff]  ;;  %vm195_vm0 = vcmask 785408   ;;  %s176_s15 = scalar_lea.vmem [#allocation7], %s402_s22  ;;  %s415_s25 = sshll.u32 %s714_s13, 9 }
  0x49   : > { %650 = vsyncadd (%p901_p8), [#allocation6], 4294965760  ;;  %432 = vmatprep.subr.mxu0 %v194_v0  ;;  %462 = vmatprep.subr.mxu1 %v194_v0  ;;  %v191_v3 = vld [vmem:[#allocation5 + $0x40] sm:$0xff]  ;;  %v190_v4 = vld [vmem:[#allocation5 + $0x38] sm:$0xff]  ;;  %s311_s17 = sshll.u32 %s176_s15, 4  ;;  %s842_s18 = scalar_lea.hbm %s886_s2, %s415_s25  ;;  %s837_s17 = int_to_ptr.vmem [resolvable:$true] %s311_s17 }
  0x4a   : > { %433 = vmatpush3.msra.mxu0 %v194_v0  ;;  %474 = vmatpush3.msra.mxu1 %v194_v0  ;;  %v189_v5 = vld [vmem:[#allocation5 + $0x30] sm:$0xff]  ;;  %v188_v6 = vld [vmem:[#allocation5 + $0x28] sm:$0xff]  ;;  %v187_v7 = vld [vmem:[#allocation5 + $0x20] sm:$0xff]  ;;  %s298_s20 = scalar_lea.sflag [#allocation4], %s814_s14  ;;  %s601_s13 = scalar_lea.vmem %s837_s17, 512 }
  0x4b   : > { %434 = vmatprep.subr.mxu0 %v193_v1  ;;  %463 = vmatprep.subr.mxu1 %v193_v1  ;;  %v186_v8 = vld [vmem:[#allocation5 + $0x18] sm:$0xff]  ;;  %v185_v9 = vld [vmem:[#allocation5 + $0x10] sm:$0xff]  ;;  %v184_v10 = vld [vmem:[#allocation5 + $0x8] sm:$0xff]  ;;  %p602_p3 = scmp.ne.s32.totalorder %s837_s17, %s601_s13  ;;  %p902_p10 = scmp.ne.s32.totalorder %s896_s30, 0 }
  0x4c   : > { %435 = vmatpush3.msra.mxu0 %v193_v1  ;;  %475 = vmatpush3.msra.mxu1 %v193_v1  ;;  %v183_v11 = vld [vmem:[#allocation5] sm:$0xff]  ;;  %v181_v13 = vld [vmem:[%s820_s19 + $0x10] sm:$0xff]  ;;  %v180_v14 = vld [vmem:[%s820_s19 + $0x8] sm:$0xff]  ;;  %s675_s24 = smov [#allocation7]  }
  0x4d   : > { %436 = vmatprep.subr.mxu0 %v192_v2  ;;  %464 = vmatprep.subr.mxu1 %v192_v2  ;;  %v179_v12 = vld [vmem:[%s820_s19] sm:$0xff]  ;;  %v182_v15 = vld [vmem:[%s820_s19 + $0x18] sm:$0xff]  ;;  %p603_p7 = pnand %p602_p3, %p902_p10  ;;  %s605_s27 = sshll.u32 %s675_s24, 4  ;;  %s606_s27 = int_to_ptr.vmem [resolvable:$false] %s605_s27 }
  0x4e   : > { %437 = vmatpush3.msra.mxu0 %v192_v2  ;;  %476 = vmatpush3.msra.mxu1 %v192_v2  ;;  %s607_s28 = scalar_lea.vmem %s606_s27, 1024  ;;  %p608_p11 = scmp.lt.s32.totalorder %s837_s17, %s606_s27 }
  0x4f   : > { %438 = vmatprep.subr.mxu0 %v191_v3  ;;  %465 = vmatprep.subr.mxu1 %v191_v3  ;;  %p604_p9 = pneg %p603_p7  ;;  %p609_p12 = scmp.lt.s32.totalorder %s607_s28, %s601_s13 }
  0x50   : > { %439 = vmatpush3.msra.mxu0 %v191_v3  ;;  %477 = vmatpush3.msra.mxu1 %v191_v3 }
  0x51   : > { %440 = vmatprep.subr.mxu0 %v190_v4  ;;  %466 = vmatprep.subr.mxu1 %v190_v4  ;;  %p610_p13 = por %p609_p12, %p608_p11 }
  0x52   : > { %441 = vmatpush3.msra.mxu0 %v190_v4  ;;  %478 = vmatpush3.msra.mxu1 %v190_v4 }
  0x53   : > { %442 = vmatprep.subr.mxu0 %v189_v5  ;;  %467 = vmatprep.subr.mxu1 %v189_v5  ;;  %p611_p0 = pnand %p610_p13, %p604_p9 }
  0x54   : > { %443 = vmatpush3.msra.mxu0 %v189_v5  ;;  %479 = vmatpush3.msra.mxu1 %v189_v5 }
  0x55   : > { %444 = vmatprep.subr.mxu0 %v188_v6  ;;  %468 = vmatprep.subr.mxu1 %v188_v6 }
  0x56   : > { %445 = vmatpush3.msra.mxu0 %v188_v6  ;;  %480 = vmatpush3.msra.mxu1 %v188_v6 }
  0x57   : > { %446 = vmatprep.subr.mxu0 %v187_v7  ;;  %469 = vmatprep.subr.mxu1 %v187_v7 }
  0x58   : > { %447 = vmatpush3.msra.mxu0 %v187_v7  ;;  %481 = vmatpush3.msra.mxu1 %v187_v7 }
  0x59   : > { %448 = vmatprep.subr.mxu0 %v186_v8  ;;  %470 = vmatprep.subr.mxu1 %v186_v8 }
  0x5a   : > { %449 = vmatpush3.msra.mxu0 %v186_v8  ;;  %482 = vmatpush3.msra.mxu1 %v186_v8 }
  0x5b   : > { %450 = vmatprep.subr.mxu0 %v185_v9  ;;  %471 = vmatprep.subr.mxu1 %v185_v9 }
  0x5c   : > { %451 = vmatpush3.msra.mxu0 %v185_v9  ;;  %483 = vmatpush3.msra.mxu1 %v185_v9 }
  0x5d   : > { %452 = vmatprep.subr.mxu0 %v184_v10  ;;  %472 = vmatprep.subr.mxu1 %v184_v10 }
  0x5e   : > { %453 = vmatpush3.msra.mxu0 %v184_v10  ;;  %484 = vmatpush3.msra.mxu1 %v184_v10 }
  0x5f   : > { %454 = vmatprep.subr.mxu0 %v183_v11  ;;  %473 = vmatprep.subr.mxu1 %v183_v11 }
  0x60   : > { %455 = vmatpush3.msra.mxu0 %v183_v11  ;;  %485 = vmatpush3.msra.mxu1 %v183_v11 }
  0x61   : > { %456 = vmatprep.mubr.msk.f32.mxu0 %vm195_vm0, %v179_v12  ;;  %459 = vmatprep.mubr.msk.f32.mxu1 %vm195_vm0, %v181_v13 }
  0x62   : > { %457 = vmatmul.mubr.msk.f32.vlgmr.msra.gmra.mxu0 %vm195_vm0, %v180_v14  ;;  %460 = vmatmul.mubr.msk.f32.vlgmr.msra.gmra.mxu1 %vm195_vm0, %v182_v15 }
 0x122   : > { %v458_v16 = vpop.f32.mrf.mxu0  ;;  %v461_v17 = vpop.f32.mrf.mxu1 }
 0x123   : > { %294 = vst [vmem:[%s176_s15 + $0x8] sm:$0xff] %v458_v16  ;;  %296 = vst [vmem:[%s176_s15 + $0x18] sm:$0xff] %v461_v17 }
 0x124   : > { %v274_v18 = vpop.f32.mrf.mxu0  ;;  %v284_v19 = vpop.f32.mrf.mxu1 }
 0x125   : > { %293 = vst [vmem:[%s176_s15] sm:$0xff] %v274_v18  ;;  %295 = vst [vmem:[%s176_s15 + $0x10] sm:$0xff] %v284_v19 }
 0x126   : > { %614 = shalt.err (!%p611_p0)
}
 0x127   : > { %s615_s4 = scalar_lea.hbm %s842_s18, 512  ;;  %s619_s6 = scalar_lea.hbm %s886_s2, 1536 }
 0x128   : > { %p616_p5 = scmp.ne.s32.totalorder %s842_s18, %s615_s4  ;;  %p620_p4 = scmp.lt.s32.totalorder %s842_s18, %s886_s2 }
 0x129   : > { %p621_p6 = scmp.lt.s32.totalorder %s619_s6, %s615_s4 }
 0x12a   : > { %p617_p2 = pnand %p616_p5, %p902_p10 }
 0x12b   : > { %p622_p8 = por %p621_p6, %p620_p4 }
 0x12c   : > { %p618_p1 = pneg %p617_p2 }
 0x12e   : > { %p623_p3 = pnand %p622_p8, %p618_p1 }
 0x130   : > { %626 = shalt.err (!%p623_p3)
}
 0x131   : > { %s676_s23 = smov 128   ;;  %s677_s19 = smov 8  }
 0x132   : > { %492 = dma.vmem_to_hbm [thread:$0]  (%p902_p10), %s837_s17, 512, %s842_s18, %s298_s20, %s676_s23, %s676_s23, %s677_s19  }
 0x133 PF: > { %p509_p7 = scmp.ge.s32.totalorder %s669_s12, 2  ;;  %s326_s15 = sand.u32 1, %s657_s9  }
 0x134   : > { %p903_p9 = scmp.ne.s32.totalorder %s892_s16, 0  ;;  %s327_s25 = scalar_lea.sflag [#allocation4], %s326_s15 }
 0x136   : > { %p503_p11 = pnand %p509_p7, %p903_p9 }
 0x138   : > { %p504_p12 = pneg %p503_p11 }
 0x13a   : > { %652 = dma.done.wait (%p504_p12), %s327_s25, 512  }
 0x13b   : > { %654 = vsyncadd (%p504_p12), %s327_s25, 4294966784  ;;  %p16_p13 = scmp.ge.s32.totalorder %s746_s21, 5   ;;  %s904_s9 = smov %s661_s10 }
 0x13c   : > { %s905_s10 = smov %s665_s11  ;;  %s906_s11 = smov %s766_s29 }
 0x13d   : > { %s907_s12 = smov %s746_s21  ;;  %18 = sbr.rel (!%p16_p13) target bundleno = 6 (0x6), region = 77 }
 0x142   :  { %332 = vsyncpa [#allocation3], 1 }
 0x143   :  { %334 = vsyncpa [#allocation3 + $0x1], 1 }
 0x144   :  { %335 = vsyncpa [#allocation6], 1 }
 0x145   :  { %336 = vsyncpa [#allocation4], 1 }
 0x146   :  { %338 = vsyncpa [#allocation4 + $0x1], 1 }

</bundles_post_ra>
